<compile_context>
chip_gen: v7x
topology: tpu7x:2x2x1
jax: 0.10.0
libtpu: 0.0.40
codegen_flags: <defaults>
</compile_context>

<pallas_src>
import math
import jax
import jax.numpy as jnp
from jax.experimental import pallas as pl
from jax.experimental.pallas import tpu as pltpu


def _critic_kernel(sa_ref, w1_ref, b1_ref, w2_ref, b2_ref, w3_ref, b3_ref,
                   q_ref):
    # Layer 1: (f0, n_in) @ (n_in, tb) -> (f0, tb); batch on the lane axis,
    # features on the sublane axis -> fully dense vregs.
    h1 = jnp.dot(w1_ref[...], sa_ref[...],
                 preferred_element_type=jnp.float32) + b1_ref[...]
    h1 = jnp.maximum(h1, 0.0)

    # Layer 2: (f1, f0) @ (f0, tb) -> (f1, tb).
    h2 = jnp.dot(w2_ref[...], h1,
                 preferred_element_type=jnp.float32) + b2_ref[...]
    h2 = jnp.maximum(h2, 0.0)

    # Layer 3 (f1 -> 1): VPU multiply + sublane (XLU) reduction.  The result
    # is already a lane-dense (1, tb) row, so the writeback is an unmasked
    # vector store with no relayout.
    q = jnp.sum(h2 * w3_ref[...], axis=0, keepdims=True)        # (1, tb) f32
    q_ref[...] = q + b3_ref[0, 0]                                # SMEM scalar


def prepare_params(params):
    """One-time conversion of module params into the kernel's layout.

    params (torch-equivalent, stored as (in, out)):
        w1 (n_in, f0), b1 (1, f0), w2 (f0, f1), b2 (f0 -> 1, f1),
        w3 (f1, 1), b3 (1, 1)
    Kernel layout: weights transposed (out, in), biases as columns, f32.
    Hoisted out of the forward so an RL loop does not pay these XLA ops per
    call.
    """
    return {
        "w1_t": jnp.asarray(params["w1"].T, jnp.float32),   # (f0, n_in)
        "b1_c": jnp.asarray(params["b1"].T, jnp.float32),   # (f0, 1)
        "w2_t": jnp.asarray(params["w2"].T, jnp.float32),   # (f1, f0)
        "b2_c": jnp.asarray(params["b2"].T, jnp.float32),   # (f1, 1)
        "w3_c": jnp.asarray(params["w3"], jnp.float32),     # (f1, 1) column
        "b3": jnp.asarray(params["b3"], jnp.float32).reshape(1, 1),
    }


def _num_tensorcores_per_chip():
    """2 on v7x-class chips (dual TensorCore), else 1 (v5e / v6e)."""
    try:
        kind = jax.devices()[0].device_kind.lower()
    except Exception:
        return 1
    return 2 if "v7" in kind else 1


def _pick_batch_tile(B):
    """Generation-aware batch tile.

    Single-TC chips (v5e / v6e): one grid step — the grid is a serial loop and
    each extra step costs ~0.35 us on a ~1 us kernel.
    Dual-TC chips (v7x): two balanced steps (each a multiple of 128) so the
    "parallel" batch axis shards across both cores.  If that tile does not
    divide B exactly, fall back to a single step so there are never partial
    blocks.
    """
    if B <= 128 or _num_tensorcores_per_chip() < 2:
        return B
    half = (B + 1) // 2
    tb = ((half + 127) // 128) * 128
    if tb >= B or B % tb != 0:
        return B
    return tb


def critic_forward(state, action, prepped):
    """Pallas forward pass of CriticNetwork.

    state:  (B, n_state)  float
    action: (B, n_action) float
    prepped: output of prepare_params().
    """
    # torch: state.float(), action.float()
    state = state.astype(jnp.float32)
    action = action.astype(jnp.float32)
    B, n_state = state.shape
    n_action = action.shape[1]

    w1_t, b1_c = prepped["w1_t"], prepped["b1_c"]
    w2_t, b2_c = prepped["w2_t"], prepped["b2_c"]
    w3_c, b3 = prepped["w3_c"], prepped["b3"]
    f0, n_in = w1_t.shape
    f1 = w2_t.shape[0]
    assert n_in == n_state + n_action
    assert w3_c.shape[1] == 1, "lane-dense output path assumes a scalar Q head"

    # Realize the concat once and put the batch on the 128-lane axis:
    # sa^T has shape (n_in, B) so the per-step input DMA is a contiguous slab.
    sa_t = jnp.concatenate([state, action], axis=1).T

    tb = _pick_batch_tile(B)
    grid = (pl.cdiv(B, tb),)   # exact division by construction

    q_row = pl.pallas_call(
        _critic_kernel,
        out_shape=jax.ShapeDtypeStruct((1, B), jnp.float32),
        grid_spec=pltpu.PrefetchScalarGridSpec(
            num_scalar_prefetch=0,
            grid=grid,
            in_specs=[
                pl.BlockSpec((n_in, tb), lambda i: (0, i)),     # sa^T tile
                # Constant-index operands: the pipeline sees the block index
                # never changes and elides per-step re-copies, so the weights
                # and biases are effectively resident across the grid.
                pl.BlockSpec((f0, n_in), lambda i: (0, 0)),     # W1^T
                pl.BlockSpec((f0, 1), lambda i: (0, 0)),        # b1 column
                pl.BlockSpec((f1, f0), lambda i: (0, 0)),       # W2^T
                pl.BlockSpec((f1, 1), lambda i: (0, 0)),        # b2 column
                pl.BlockSpec((f1, 1), lambda i: (0, 0)),        # w3 column
                # b3 as an SMEM scalar (no padded VMEM tile / double buffer).
                pl.BlockSpec(memory_space=pltpu.MemorySpace.SMEM),
            ],
            out_specs=pl.BlockSpec((1, tb), lambda i: (0, i)),  # lane-dense q
        ),
        compiler_params=pltpu.CompilerParams(
            dimension_semantics=("parallel",)),
    )(sa_t, w1_t, b1_c, w2_t, b2_c, w3_c, b3)

    # Matches torch.squeeze(q): (B,) for B > 1, 0-d scalar for B == 1.
    return jnp.squeeze(q_row)


def init_params(key, n_input, n_features, n_output):
    """Deterministic Xavier-uniform init matching the PyTorch module."""
    def xavier(key, fan_in, fan_out, gain):
        bound = gain * math.sqrt(6.0 / (fan_in + fan_out))
        # stored as (in, out) = torch weight (out, in) transposed
        return jax.random.uniform(key, (fan_in, fan_out), jnp.float32,
                                  minval=-bound, maxval=bound)

    def bias(key, fan_in, fan_out):
        # default nn.Linear bias init: U(-1/sqrt(fan_in), 1/sqrt(fan_in))
        b = 1.0 / math.sqrt(fan_in)
        return jax.random.uniform(key, (1, fan_out), jnp.float32,
                                  minval=-b, maxval=b)

    gain_relu = math.sqrt(2.0)   # calculate_gain('relu')
    gain_lin = 1.0               # calculate_gain('linear')
    f0, f1 = n_features
    k = jax.random.split(key, 6)
    return {
        "w1": xavier(k[0], n_input, f0, gain_relu),
        "b1": bias(k[1], n_input, f0),
        "w2": xavier(k[2], f0, f1, gain_relu),
        "b2": bias(k[3], f0, f1),
        "w3": xavier(k[4], f1, n_output, gain_lin),
        "b3": bias(k[5], f1, n_output),
    }


if __name__ == "__main__":
    key = jax.random.PRNGKey(0)

    batch = 512                           # v7x: 2x256 steps; v5e/v6e: 1 step
    n_state, n_action = 6, 2
    n_input = n_state + n_action          # input_shape[-1]
    n_features = (32, 32)
    n_output = 1                          # output_shape[0]

    k_state, k_action, k_params = jax.random.split(key, 3)
    state = jax.random.normal(k_state, (batch, n_state), jnp.float32)
    action = jax.random.normal(k_action, (batch, n_action), jnp.float32)
    params = init_params(k_params, n_input, n_features, n_output)

    prepped = prepare_params(params)      # one-time param layout conversion

    @jax.jit
    def fwd(s, a):
        return critic_forward(s, a, prepped)

    q = jax.block_until_ready(fwd(state, action))
    assert q.shape == (batch,), q.shape

    # Pure-f32 reference with the original module's math (concat -> Linear
    # -> ReLU -> Linear -> ReLU -> Linear -> squeeze).  The kernel is f32
    # throughout; tolerance only covers MXU vs. XLA accumulation-order noise.
    sa = jnp.concatenate([state, action], axis=1)
    h1f = jnp.maximum(sa @ params["w1"] + params["b1"], 0.0)
    h2f = jnp.maximum(h1f @ params["w2"] + params["b2"], 0.0)
    q_ref = jnp.squeeze(h2f @ params["w3"] + params["b3"])
    assert jnp.allclose(q, q_ref, atol=5e-3, rtol=5e-3), \
        float(jnp.max(jnp.abs(q - q_ref)))

    print("KERNEL_OK")
</pallas_src>

<mosaic_0001>
module attributes {stable_mosaic.version = 11 : i64} {
  func.func @_critic_kernel(%arg0: i32, %arg1: memref<8x512xf32, #tpu.memory_space<vmem>>, %arg2: memref<32x8xf32, #tpu.memory_space<vmem>>, %arg3: memref<32x1xf32, #tpu.memory_space<vmem>>, %arg4: memref<32x32xf32, #tpu.memory_space<vmem>>, %arg5: memref<32x1xf32, #tpu.memory_space<vmem>>, %arg6: memref<32x1xf32, #tpu.memory_space<vmem>>, %arg7: memref<1x1xf32, #tpu.memory_space<smem>>, %arg8: memref<1x512xf32, #tpu.memory_space<vmem>>) attributes {dimension_semantics = [#tpu.dimension_semantics<parallel>], iteration_bounds = array<i64: 1>, scalar_prefetch = 0 : i64, scratch_operands = 0 : i64, tpu.core_type = #tpu.core_type<tc>, window_params = [{transform_indices = @transform_0, window_bounds = array<i64: 8, 512>}, {pipeline_mode = #tpu.pipeline_mode<synchronous>, transform_indices = @transform_1, window_bounds = array<i64: 32, 8>}, {pipeline_mode = #tpu.pipeline_mode<synchronous>, transform_indices = @transform_2, window_bounds = array<i64: 32, 1>}, {pipeline_mode = #tpu.pipeline_mode<synchronous>, transform_indices = @transform_3, window_bounds = array<i64: 32, 32>}, {pipeline_mode = #tpu.pipeline_mode<synchronous>, transform_indices = @transform_4, window_bounds = array<i64: 32, 1>}, {pipeline_mode = #tpu.pipeline_mode<synchronous>, transform_indices = @transform_5, window_bounds = array<i64: 32, 1>}, {transform_indices = @transform_6, window_bounds = array<i64: 1, 1>}, {transform_indices = @transform_7, window_bounds = array<i64: 1, 512>}]} {
    %c0 = arith.constant 0 : index
    %c0_0 = arith.constant 0 : index
    %0 = vector.load %arg2[%c0, %c0_0] : memref<32x8xf32, #tpu.memory_space<vmem>>, vector<32x8xf32>
    %c0_1 = arith.constant 0 : index
    %c0_2 = arith.constant 0 : index
    %1 = vector.load %arg1[%c0_1, %c0_2] : memref<8x512xf32, #tpu.memory_space<vmem>>, vector<8x512xf32>
    %cst = arith.constant dense<0.000000e+00> : vector<32x512xf32>
    %2 = tpu.matmul %0, %1, %cst {dimension_numbers = #tpu.dot_dimension_numbers<[1], [0], [0], [1], [0, 0, 1, 1], [], []>} : vector<32x8xf32>, vector<8x512xf32>, vector<32x512xf32> -> vector<32x512xf32>
    %c0_3 = arith.constant 0 : index
    %c0_4 = arith.constant 0 : index
    %3 = vector.load %arg3[%c0_3, %c0_4] : memref<32x1xf32, #tpu.memory_space<vmem>>, vector<32x1xf32>
    %4 = vector.broadcast %3 : vector<32x1xf32> to vector<32x512xf32>
    %5 = arith.addf %2, %4 : vector<32x512xf32>
    %cst_5 = arith.constant 0.000000e+00 : f32
    %6 = vector.broadcast %cst_5 : f32 to vector<32x512xf32>
    %7 = arith.maximumf %5, %6 : vector<32x512xf32>
    %c0_6 = arith.constant 0 : index
    %c0_7 = arith.constant 0 : index
    %8 = vector.load %arg4[%c0_6, %c0_7] : memref<32x32xf32, #tpu.memory_space<vmem>>, vector<32x32xf32>
    %cst_8 = arith.constant dense<0.000000e+00> : vector<32x512xf32>
    %9 = tpu.matmul %8, %7, %cst_8 {dimension_numbers = #tpu.dot_dimension_numbers<[1], [0], [0], [1], [0, 0, 1, 1], [], []>} : vector<32x32xf32>, vector<32x512xf32>, vector<32x512xf32> -> vector<32x512xf32>
    %c0_9 = arith.constant 0 : index
    %c0_10 = arith.constant 0 : index
    %10 = vector.load %arg5[%c0_9, %c0_10] : memref<32x1xf32, #tpu.memory_space<vmem>>, vector<32x1xf32>
    %11 = vector.broadcast %10 : vector<32x1xf32> to vector<32x512xf32>
    %12 = arith.addf %9, %11 : vector<32x512xf32>
    %cst_11 = arith.constant 0.000000e+00 : f32
    %13 = vector.broadcast %cst_11 : f32 to vector<32x512xf32>
    %14 = arith.maximumf %12, %13 : vector<32x512xf32>
    %c0_12 = arith.constant 0 : index
    %c0_13 = arith.constant 0 : index
    %15 = vector.load %arg6[%c0_12, %c0_13] : memref<32x1xf32, #tpu.memory_space<vmem>>, vector<32x1xf32>
    %16 = vector.broadcast %15 : vector<32x1xf32> to vector<32x512xf32>
    %17 = arith.mulf %14, %16 : vector<32x512xf32>
    %cst_14 = arith.constant dense<0.000000e+00> : vector<512xf32>
    %18 = vector.multi_reduction <add>, %17, %cst_14 [0] : vector<32x512xf32> to vector<512xf32>
    %19 = vector.shape_cast %18 : vector<512xf32> to vector<1x512xf32>
    %c0_15 = arith.constant 0 : index
    %c0_16 = arith.constant 0 : index
    %20 = memref.load %arg7[%c0_15, %c0_16] : memref<1x1xf32, #tpu.memory_space<smem>>
    %21 = vector.broadcast %20 : f32 to vector<1x512xf32>
    %22 = arith.addf %19, %21 : vector<1x512xf32>
    %c0_17 = arith.constant 0 : index
    %c0_18 = arith.constant 0 : index
    %23 = vector.load %arg8[%c0_17, %c0_18] : memref<1x512xf32, #tpu.memory_space<vmem>>, vector<1x512xf32>
    tpu.vector_store %arg8[%c0_17, %c0_18], %22 {strides = array<i32>} : memref<1x512xf32, #tpu.memory_space<vmem>>, vector<1x512xf32>,
    return
  }
  func.func @transform_0(%arg0: i32) -> (i32, i32) {
    %c0_i32 = arith.constant 0 : i32
    %c0_i32_0 = arith.constant 0 : i32
    return %c0_i32, %arg0 : i32, i32
  }
  func.func @transform_1(%arg0: i32) -> (i32, i32) {
    %c0_i32 = arith.constant 0 : i32
    %c0_i32_0 = arith.constant 0 : i32
    %c0_i32_1 = arith.constant 0 : i32
    return %c0_i32, %c0_i32_0 : i32, i32
  }
  func.func @transform_2(%arg0: i32) -> (i32, i32) {
    %c0_i32 = arith.constant 0 : i32
    %c0_i32_0 = arith.constant 0 : i32
    %c0_i32_1 = arith.constant 0 : i32
    return %c0_i32, %c0_i32_0 : i32, i32
  }
  func.func @transform_3(%arg0: i32) -> (i32, i32) {
    %c0_i32 = arith.constant 0 : i32
    %c0_i32_0 = arith.constant 0 : i32
    %c0_i32_1 = arith.constant 0 : i32
    return %c0_i32, %c0_i32_0 : i32, i32
  }
  func.func @transform_4(%arg0: i32) -> (i32, i32) {
    %c0_i32 = arith.constant 0 : i32
    %c0_i32_0 = arith.constant 0 : i32
    %c0_i32_1 = arith.constant 0 : i32
    return %c0_i32, %c0_i32_0 : i32, i32
  }
  func.func @transform_5(%arg0: i32) -> (i32, i32) {
    %c0_i32 = arith.constant 0 : i32
    %c0_i32_0 = arith.constant 0 : i32
    %c0_i32_1 = arith.constant 0 : i32
    return %c0_i32, %c0_i32_0 : i32, i32
  }
  func.func @transform_6(%arg0: i32) -> (i32, i32) {
    %c0_i32 = arith.constant 0 : i32
    %c0_i32_0 = arith.constant 0 : i32
    %c0_i32_1 = arith.constant 0 : i32
    return %c0_i32, %c0_i32_0 : i32, i32
  }
  func.func @transform_7(%arg0: i32) -> (i32, i32) {
    %c0_i32 = arith.constant 0 : i32
    %c0_i32_0 = arith.constant 0 : i32
    return %c0_i32, %arg0 : i32, i32
  }
}

</mosaic_0001>

<bundles_post_ra>
// kernel: fwd.1
= control target key start
LH: loop header
LB: loop body
LE: loop exit
PB: predicated region body
PF: predicated region fallthrough
CT: control target
= control target key end

     0   :  { %13 = vsyncpa [#allocation4], 0  ;;  %s1002_s0 = inlined_call_operand.vmem [shape: f32[8,512], index: 0, kind: input, shape index: {}]   ;;  %s1003_s1 = inlined_call_operand.hbm [shape: f32[32,8], index: 1, kind: input, shape index: {}]   ;;  %s1004_s2 = inlined_call_operand.hbm [shape: f32[32,1], index: 2, kind: input, shape index: {}]   ;;  %s1005_s3 = inlined_call_operand.hbm [shape: f32[32,32], index: 3, kind: input, shape index: {}]   ;;  %s1006_s4 = inlined_call_operand.vmem [shape: f32[32,1], index: 4, kind: input, shape index: {}]   ;;  %s1007_s5 = inlined_call_operand.vmem [shape: f32[32,1], index: 5, kind: input, shape index: {}]   ;;  %s1008_s6 = inlined_call_operand.<no memory space> [shape: f32[1,1], index: 6, kind: input, shape index: {}]   ;;  %s1009_s7 = inlined_call_operand.hbm [shape: f32[1,512], index: 7, kind: output, shape index: {}]  }
   0x1   :  { %14 = vsyncpa [#allocation7], 0 }
   0x2   :  { %15 = vsyncpa [#allocation5], 0  ;;  %s812_s24 = smov [#allocation6]   ;;  %s813_s26 = smov [#allocation3]  }
   0x3   :  { %s35_s25 = sshll.u32 %s812_s24, 4  ;;  %s23_s27 = sshll.u32 %s813_s26, 4  ;;  %s36_s25 = int_to_ptr.vmem [resolvable:$true] %s35_s25  ;;  %s861_s27 = int_to_ptr.vmem [resolvable:$true] %s23_s27 }
   0x4   :  { %s718_s30 = scalar_lea.hbm %s1004_s2, 512 }
   0x5   :  { %p719_p0 = scmp.ne.s32.totalorder %s1004_s2, %s718_s30  ;;  %p722_p1 = scmp.lt.u32.totalorder %s718_s30, %s1004_s2 }
   0x7   :  { %p724_p2 = pnand %p722_p1, %p719_p0 }
   0x9   :  { %727 = shalt.err (!%p724_p2)
}
   0xa   :  { %s728_s12 = scalar_lea.vmem %s36_s25, 512  ;;  %p733_p4 = scmp.lt.s32.totalorder %s36_s25, %s36_s25 }
   0xb   :  { %p729_p3 = scmp.ne.s32.totalorder %s36_s25, %s728_s12  ;;  %p734_p5 = scmp.lt.s32.totalorder %s728_s12, %s728_s12 }
   0xd   :  { %p735_p6 = por %p734_p5, %p733_p4 }
   0xf   :  { %p736_p7 = pnand %p735_p6, %p729_p3 }
  0x11   :  { %739 = shalt.err (!%p736_p7)
}
  0x12   :  { %s814_s13 = smov 128   ;;  %s815_s14 = smov 8  }
  0x13   :  { %41 = dma.hbm_to_vmem [thread:$0]  %s1004_s2, 512, %s36_s25, [#allocation7], %s814_s13, %s814_s13, %s815_s14  }
  0x14   :  { %s740_s19 = scalar_lea.hbm %s1003_s1, 512 }
  0x15   :  { %p741_p8 = scmp.ne.s32.totalorder %s1003_s1, %s740_s19  ;;  %p744_p9 = scmp.lt.u32.totalorder %s740_s19, %s1003_s1 }
  0x17   :  { %p746_p10 = pnand %p744_p9, %p741_p8 }
  0x19   :  { %749 = shalt.err (!%p746_p10)
}
  0x1a   :  { %s750_s24 = scalar_lea.vmem %s861_s27, 512  ;;  %p755_p12 = scmp.lt.s32.totalorder %s861_s27, %s861_s27 }
  0x1b   :  { %p751_p11 = scmp.ne.s32.totalorder %s861_s27, %s750_s24  ;;  %p756_p13 = scmp.lt.s32.totalorder %s750_s24, %s750_s24 }
  0x1d   :  { %p757_p0 = por %p756_p13, %p755_p12 }
  0x1f   :  { %p758_p1 = pnand %p757_p0, %p751_p11 }
  0x21   :  { %761 = shalt.err (!%p758_p1)
}
  0x22   :  { %29 = dma.hbm_to_vmem [thread:$0]  %s1003_s1, 512, %s861_s27, [#allocation4], %s814_s13, %s814_s13, %s815_s14  }
  0x23   :  { %s816_s26 = smov [#allocation8]   ;;  %s762_s8 = scalar_lea.hbm %s1005_s3, 512 }
  0x24   :  { %s47_s28 = sshll.u32 %s816_s26, 4  ;;  %p763_p2 = scmp.ne.s32.totalorder %s1005_s3, %s762_s8  ;;  %s48_s28 = int_to_ptr.vmem [resolvable:$true] %s47_s28 }
  0x25   :  { %p766_p3 = scmp.lt.u32.totalorder %s762_s8, %s1005_s3 }
  0x27   :  { %p768_p4 = pnand %p766_p3, %p763_p2 }
  0x29   :  { %771 = shalt.err (!%p768_p4)
}
  0x2a   :  { %s772_s15 = scalar_lea.vmem %s48_s28, 512  ;;  %p777_p6 = scmp.lt.s32.totalorder %s48_s28, %s48_s28 }
  0x2b   :  { %p773_p5 = scmp.ne.s32.totalorder %s48_s28, %s772_s15  ;;  %p778_p7 = scmp.lt.s32.totalorder %s772_s15, %s772_s15 }
  0x2d   :  { %p779_p8 = por %p778_p7, %p777_p6 }
  0x2f   :  { %p780_p9 = pnand %p779_p8, %p773_p5 }
  0x31   :  { %783 = shalt.err (!%p780_p9)
}
  0x32   :  { %53 = dma.hbm_to_vmem [thread:$0]  %s1005_s3, 512, %s48_s28, [#allocation7], %s814_s13, %s814_s13, %s815_s14  }
  0x33   :  { %806 = dma.done.wait [#allocation4], 512  }
  0x34   :  { %807 = vsyncadd [#allocation4], 4294966784 }
  0x35   :  { %808 = dma.done.wait [#allocation7], 1024  }
  0x36   :  { %809 = vsyncadd [#allocation7], 4294966272  ;;  %v817_v0 = vmov 0.0   ;;  %v818_v1 = vmov 0   ;;  %v74_v2 = vld [vmem:[%s1002_s0 + $0x8] sm:$0xff]  ;;  %v76_v3 = vld [vmem:[%s1002_s0 + $0x18] sm:$0xff] }
  0x37   :  { %178 = vmatprep.mubr.f32.mxu0 %v817_v0  ;;  %267 = vmatprep.mubr.f32.mxu1 %v817_v0  ;;  %v73_v4 = vld [vmem:[%s1002_s0] sm:$0xff]  ;;  %vm101_vm0 = vcmask 64512   ;;  %v75_v5 = vld [vmem:[%s1002_s0 + $0x10] sm:$0xff]  ;;  %v70_v9 = vld [vmem:[#allocation3 + $0x8] sm:$0xff]  ;;  %vm336_vm1 = vcmask 261120   ;;  %s820_s15 = smov [#allocation9]  }
  0x38   :  { %716 = vset.pattern.permute.xlu0 %v818_v1  ;;  %717 = vset.pattern.permute.xlu1 %v818_v1  ;;  %v69_v6 = vld [vmem:[#allocation3] sm:$0xff]  ;;  %v79_v8 = vld [vmem:[#allocation6 + $0x10] sm:$0xff]  ;;  %v78_v10 = vld [vmem:[#allocation6 + $0x8] sm:$0xff] }
  0x39   :  { %114 = vmatprep.subr.mxu0 %v74_v2  ;;  %203 = vmatprep.subr.mxu1 %v76_v3  ;;  %v77_v7 = vld [vmem:[#allocation6] sm:$0xff]  ;;  %v80_v11 = vld [vmem:[#allocation6 + $0x18] sm:$0xff]  ;;  %v71_v12 = vld [vmem:[#allocation3 + $0x10] sm:$0xff] }
  0x3a   :  { %115 = vmatpush1.msra.mxu0 %v73_v4  ;;  %204 = vmatpush1.msra.mxu1 %v75_v5  ;;  %v312_v13 = vld [vmem:[%s1006_s4] sm:$0xff]  ;;  %v313_v14 = vld [vmem:[%s1006_s4 + $0x8] sm:$0xff]  ;;  %v72_v15 = vld [vmem:[#allocation3 + $0x18] sm:$0xff] }
  0x3b   :  { %675 = vmatmul.mubr.msk.f32.vlgmr.msra.gmra.mrb[0].mxu0 %vm101_vm0, %v69_v6  ;;  %679 = vmatmul.mubr.msk.f32.vlgmr.msra.gmra.mrb[0].mxu1 %vm101_vm0, %v69_v6  ;;  %v314_v16 = vld [vmem:[%s1006_s4 + $0x10] sm:$0xff]  ;;  %v315_v17 = vld [vmem:[%s1006_s4 + $0x18] sm:$0xff]  ;;  %v543_v18 = vld [vmem:[%s1007_s5] sm:$0xff] }
  0x3c   :  { %184 = vmatprep.mubr.f32.mxu0 %v817_v0  ;;  %273 = vmatprep.mubr.f32.mxu1 %v817_v0  ;;  %v544_v19 = vld [vmem:[%s1007_s5 + $0x8] sm:$0xff]  ;;  %v545_v20 = vld [vmem:[%s1007_s5 + $0x10] sm:$0xff]  ;;  %v546_v21 = vld [vmem:[%s1007_s5 + $0x18] sm:$0xff] }
  0x3d   :  { %83 = vperm.xlu0 %716, %v77_v7   ;;  %93 = vperm.xlu1 %717, %v79_v8  }
  0x3f   :  { %676 = vmatmul.mubr.msk.f32.gmra.mrb[2].mxu0 %vm101_vm0, %v70_v9  ;;  %680 = vmatmul.mubr.msk.f32.gmra.mrb[2].mxu1 %vm101_vm0, %v70_v9 }
  0x40   :  { %190 = vmatprep.mubr.f32.mxu0 %v817_v0  ;;  %279 = vmatprep.mubr.f32.mxu1 %v817_v0 }
  0x41   :  { %88 = vperm.xlu0 %716, %v78_v10   ;;  %98 = vperm.xlu1 %717, %v80_v11  }
  0x43   :  { %677 = vmatmul.mubr.msk.f32.gmra.mrb[4].mxu0 %vm101_vm0, %v71_v12  ;;  %681 = vmatmul.mubr.msk.f32.gmra.mrb[4].mxu1 %vm101_vm0, %v71_v12 }
  0x44   :  { %196 = vmatprep.mubr.f32.mxu0 %v817_v0  ;;  %285 = vmatprep.mubr.f32.mxu1 %v817_v0 }
  0x45   :  { %318 = vperm.xlu0 %716, %v312_v13   ;;  %323 = vperm.xlu1 %717, %v313_v14  }
  0x47   :  { %678 = vmatmul.mubr.msk.f32.gmra.mrb[6].mxu0 %vm101_vm0, %v72_v15  ;;  %682 = vmatmul.mubr.msk.f32.gmra.mrb[6].mxu1 %vm101_vm0, %v72_v15 }
  0x48   :  { %413 = vmatprep.mubr.f32.mxu0 %v817_v0  ;;  %502 = vmatprep.mubr.f32.mxu1 %v817_v0 }
  0x49   :  { %328 = vperm.xlu0 %716, %v314_v16   ;;  %333 = vperm.xlu1 %717, %v315_v17  }
  0x4d   :  { %549 = vperm.xlu0 %716, %v543_v18   ;;  %554 = vperm.xlu1 %717, %v544_v19   ;;  %v308_v19 = vld [vmem:[#allocation8] sm:$0xff] }
  0x51   :  { %559 = vperm.xlu0 %716, %v545_v20   ;;  %564 = vperm.xlu1 %717, %v546_v21   ;;  %v309_v20 = vld [vmem:[#allocation8 + $0x8] sm:$0xff]  ;;  %v310_v21 = vld [vmem:[#allocation8 + $0x10] sm:$0xff] }
  0xbc   :  { %v84_v22 = vpop.permute.xlu0 %83  ;;  %v94_v28 = vpop.permute.xlu1 %93 }
  0xc0   :  { %v89_v27 = vpop.permute.xlu0 %88  ;;  %v99_v57 = vpop.permute.xlu1 %98 }
 0x10e   :  { %v180_v23 = vpop.f32.mrb[0].mxu0  ;;  %v269_v24 = vpop.f32.mrb[0].mxu1 }
 0x10f   :  { %v182_v25 = vpop.f32.mrb[1].mxu0  ;;  %v271_v26 = vpop.f32.mrb[1].mxu1  ;;  %v181_v29 = vadd.f32 %v180_v23, %v84_v22  ;;  %v270_v30 = vadd.f32 %v269_v24, %v84_v22 }
 0x110   :  { %v183_v31 = vadd.f32 %v182_v25, %v84_v22  ;;  %v272_v32 = vadd.f32 %v271_v26, %v84_v22  ;;  %v311_v22 = vld [vmem:[#allocation8 + $0x18] sm:$0xff]  ;;  %v319_v23 = vpop.permute.xlu0 %318  ;;  %v324_v24 = vpop.permute.xlu1 %323 }
 0x111   :  { %v292_v41 = vmax.f32 %v181_v29, 0.0  ;;  %v294_v42 = vmax.f32 %v270_v30, 0.0 }
 0x112   :  { %v186_v33 = vpop.f32.mrb[2].mxu0  ;;  %v275_v34 = vpop.f32.mrb[2].mxu1  ;;  %v293_v45 = vmax.f32 %v183_v31, 0.0  ;;  %v295_v46 = vmax.f32 %v272_v32, 0.0 }
 0x113   :  { %v187_v35 = vadd.f32 %v186_v33, %v89_v27  ;;  %v276_v36 = vadd.f32 %v275_v34, %v89_v27  ;;  %v188_v37 = vpop.f32.mrb[3].mxu0  ;;  %v277_v38 = vpop.f32.mrb[3].mxu1 }
 0x114   :  { %v189_v39 = vadd.f32 %v188_v37, %v89_v27  ;;  %v278_v40 = vadd.f32 %v277_v38, %v89_v27  ;;  %v329_v25 = vpop.permute.xlu0 %328  ;;  %v981_v26 = vpop.permute.xlu1 %333 }
 0x115   :  { %v296_v43 = vmax.f32 %v187_v35, 0.0  ;;  %v298_v44 = vmax.f32 %v276_v36, 0.0 }
 0x116   :  { %v297_v47 = vmax.f32 %v189_v39, 0.0  ;;  %v299_v48 = vmax.f32 %v278_v40, 0.0  ;;  %v192_v49 = vpop.f32.mrb[4].mxu0  ;;  %v281_v50 = vpop.f32.mrb[4].mxu1 }
 0x117   :  { %v693_v51 = vpack.c.bf16 %v296_v43, %v292_v41  ;;  %v701_v52 = vpack.c.bf16 %v298_v44, %v294_v42  ;;  %v194_v53 = vpop.f32.mrb[5].mxu0  ;;  %v283_v54 = vpop.f32.mrb[5].mxu1  ;;  %v193_v58 = vadd.f32 %v192_v49, %v94_v28  ;;  %v282_v59 = vadd.f32 %v281_v50, %v94_v28 }
 0x118   :  { %v691_v55 = vpack.c.bf16 %v297_v47, %v293_v45  ;;  %v699_v56 = vpack.c.bf16 %v299_v48, %v295_v46  ;;  %v195_v60 = vadd.f32 %v194_v53, %v94_v28  ;;  %v284_v61 = vadd.f32 %v283_v54, %v94_v28  ;;  %v550_v35 = vpop.permute.xlu0 %549  ;;  %v555_v47 = vpop.permute.xlu1 %554 }
 0x119   :  { %v300_v7 = vmax.f32 %v193_v58, 0.0  ;;  %v302_v8 = vmax.f32 %v282_v59, 0.0 }
 0x11a   :  { %v198_v62 = vpop.f32.mrb[6].mxu0  ;;  %v287_v63 = vpop.f32.mrb[6].mxu1  ;;  %692 = vmatprep.subr.bf16.mxu0 %v691_v55  ;;  %700 = vmatprep.subr.bf16.mxu1 %v699_v56  ;;  %v301_v11 = vmax.f32 %v195_v60, 0.0  ;;  %v303_v12 = vmax.f32 %v284_v61, 0.0 }
 0x11b   :  { %v199_v1 = vadd.f32 %v198_v62, %v99_v57  ;;  %v288_v2 = vadd.f32 %v287_v63, %v99_v57  ;;  %v200_v3 = vpop.f32.mrb[7].mxu0  ;;  %v289_v4 = vpop.f32.mrb[7].mxu1  ;;  %694 = vmatpush1.bf16.msra.mxu0 %v693_v51  ;;  %702 = vmatpush1.bf16.msra.mxu1 %v701_v52 }
 0x11c   :  { %v201_v5 = vadd.f32 %v200_v3, %v99_v57  ;;  %v290_v6 = vadd.f32 %v289_v4, %v99_v57 }
 0x11d   :  { %v304_v9 = vmax.f32 %v199_v1, 0.0  ;;  %v306_v10 = vmax.f32 %v288_v2, 0.0 }
 0x11e   :  { %v305_v13 = vmax.f32 %v201_v5, 0.0  ;;  %v307_v14 = vmax.f32 %v290_v6, 0.0  ;;  %v560_v5 = vpop.permute.xlu0 %559 }
 0x11f   :  { %v697_v15 = vpack.c.bf16 %v304_v9, %v300_v7  ;;  %v705_v16 = vpack.c.bf16 %v306_v10, %v302_v8 }
 0x120   :  { %v695_v17 = vpack.c.bf16 %v305_v13, %v301_v11  ;;  %v703_v18 = vpack.c.bf16 %v307_v14, %v303_v12 }
 0x122   :  { %696 = vmatprep.subr.bf16.mxu0 %v695_v17  ;;  %704 = vmatprep.subr.bf16.mxu1 %v703_v18 }
 0x123   :  { %698 = vmatpush1.bf16.msra.mxu0 %v697_v15  ;;  %706 = vmatpush1.bf16.msra.mxu1 %v705_v16 }
 0x126   :  { %683 = vmatmul.mubr.msk.f32.vlgmr.msra.gmra.mrb[8].mxu0 %vm336_vm1, %v308_v19  ;;  %687 = vmatmul.mubr.msk.f32.vlgmr.msra.gmra.mrb[8].mxu1 %vm336_vm1, %v308_v19 }
 0x127   :  { %419 = vmatprep.mubr.f32.mxu0 %v817_v0  ;;  %508 = vmatprep.mubr.f32.mxu1 %v817_v0 }
 0x12a   :  { %684 = vmatmul.mubr.msk.f32.gmra.mrb[10].mxu0 %vm336_vm1, %v309_v20  ;;  %688 = vmatmul.mubr.msk.f32.gmra.mrb[10].mxu1 %vm336_vm1, %v309_v20 }
 0x12b   :  { %425 = vmatprep.mubr.f32.mxu0 %v817_v0  ;;  %514 = vmatprep.mubr.f32.mxu1 %v817_v0 }
 0x12e   :  { %685 = vmatmul.mubr.msk.f32.gmra.mrb[12].mxu0 %vm336_vm1, %v310_v21  ;;  %689 = vmatmul.mubr.msk.f32.gmra.mrb[12].mxu1 %vm336_vm1, %v310_v21 }
 0x12f   :  { %431 = vmatprep.mubr.f32.mxu0 %v817_v0  ;;  %520 = vmatprep.mubr.f32.mxu1 %v817_v0 }
 0x132   :  { %686 = vmatmul.mubr.msk.f32.gmra.mrb[14].mxu0 %vm336_vm1, %v311_v22  ;;  %690 = vmatmul.mubr.msk.f32.gmra.mrb[14].mxu1 %vm336_vm1, %v311_v22 }
 0x1f9   :  { %v415_v27 = vpop.f32.mrb[8].mxu0  ;;  %v504_v28 = vpop.f32.mrb[8].mxu1 }
 0x1fa   :  { %v416_v29 = vadd.f32 %v415_v27, %v319_v23  ;;  %v505_v30 = vadd.f32 %v504_v28, %v319_v23  ;;  %v417_v31 = vpop.f32.mrb[9].mxu0  ;;  %v506_v32 = vpop.f32.mrb[9].mxu1 }
 0x1fb   :  { %v418_v33 = vadd.f32 %v417_v31, %v319_v23  ;;  %v507_v34 = vadd.f32 %v506_v32, %v319_v23  ;;  %v565_v31 = vpop.permute.xlu1 %564 }
 0x1fc   :  { %v527_v0 = vmax.f32 %v416_v29, 0.0  ;;  %v529_v36 = vmax.f32 %v505_v30, 0.0 }
 0x1fd   :  { %v528_v37 = vmax.f32 %v418_v33, 0.0  ;;  %v530_v38 = vmax.f32 %v507_v34, 0.0  ;;  %v421_v39 = vpop.f32.mrb[10].mxu0  ;;  %v510_v40 = vpop.f32.mrb[10].mxu1 }
 0x1fe   :  { %v422_v41 = vadd.f32 %v421_v39, %v324_v24  ;;  %v511_v42 = vadd.f32 %v510_v40, %v324_v24  ;;  %v423_v43 = vpop.f32.mrb[11].mxu0  ;;  %v512_v44 = vpop.f32.mrb[11].mxu1  ;;  %v567_v48 = vmul.f32 %v550_v35, %v527_v0  ;;  %v569_v49 = vmul.f32 %v550_v35, %v529_v36 }
 0x1ff   :  { %v424_v45 = vadd.f32 %v423_v43, %v324_v24  ;;  %v513_v46 = vadd.f32 %v512_v44, %v324_v24  ;;  %v568_v52 = vmul.f32 %v550_v35, %v528_v37  ;;  %v570_v53 = vmul.f32 %v550_v35, %v530_v38 }
 0x200   :  { %v531_v50 = vmax.f32 %v422_v41, 0.0  ;;  %v533_v51 = vmax.f32 %v511_v42, 0.0 }
 0x201   :  { %v532_v54 = vmax.f32 %v424_v45, 0.0  ;;  %v534_v55 = vmax.f32 %v513_v46, 0.0  ;;  %v427_v56 = vpop.f32.mrb[12].mxu0  ;;  %v516_v57 = vpop.f32.mrb[12].mxu1 }
 0x202   :  { %v571_v58 = vmul.f32 %v555_v47, %v531_v50  ;;  %v573_v59 = vmul.f32 %v555_v47, %v533_v51  ;;  %v428_v60 = vadd.f32 %v427_v56, %v329_v25  ;;  %v517_v61 = vadd.f32 %v516_v57, %v329_v25  ;;  %v429_v62 = vpop.f32.mrb[13].mxu0  ;;  %v518_v63 = vpop.f32.mrb[13].mxu1 }
 0x203   :  { %v572_v1 = vmul.f32 %v555_v47, %v532_v54  ;;  %v574_v2 = vmul.f32 %v555_v47, %v534_v55  ;;  %v430_v3 = vadd.f32 %v429_v62, %v329_v25  ;;  %v519_v4 = vadd.f32 %v518_v63, %v329_v25 }
 0x204   :  { %v583_v6 = vadd.f32 %v571_v58, %v567_v48  ;;  %v601_v7 = vadd.f32 %v573_v59, %v569_v49  ;;  %v535_v8 = vmax.f32 %v428_v60, 0.0  ;;  %v537_v9 = vmax.f32 %v517_v61, 0.0 }
 0x205   :  { %v592_v10 = vadd.f32 %v572_v1, %v568_v52  ;;  %v610_v11 = vadd.f32 %v574_v2, %v570_v53  ;;  %v536_v12 = vmax.f32 %v430_v3, 0.0  ;;  %v538_v13 = vmax.f32 %v519_v4, 0.0  ;;  %v433_v14 = vpop.f32.mrb[14].mxu0  ;;  %v522_v15 = vpop.f32.mrb[14].mxu1 }
 0x206   :  { %v575_v16 = vmul.f32 %v560_v5, %v535_v8  ;;  %v577_v17 = vmul.f32 %v560_v5, %v537_v9  ;;  %v434_v18 = vadd.f32 %v433_v14, %v981_v26  ;;  %v523_v19 = vadd.f32 %v522_v15, %v981_v26  ;;  %v435_v20 = vpop.f32.mrb[15].mxu0  ;;  %v524_v21 = vpop.f32.mrb[15].mxu1 }
 0x207   :  { %v576_v22 = vmul.f32 %v560_v5, %v536_v12  ;;  %v578_v23 = vmul.f32 %v560_v5, %v538_v13  ;;  %v436_v24 = vadd.f32 %v435_v20, %v981_v26  ;;  %v525_v25 = vadd.f32 %v524_v21, %v981_v26 }
 0x208   :  { %v584_v27 = vadd.f32 %v583_v6, %v575_v16  ;;  %v602_v28 = vadd.f32 %v601_v7, %v577_v17  ;;  %v539_v29 = vmax.f32 %v434_v18, 0.0  ;;  %v541_v30 = vmax.f32 %v523_v19, 0.0 }
 0x209   :  { %v593_v32 = vadd.f32 %v592_v10, %v576_v22  ;;  %v611_v33 = vadd.f32 %v610_v11, %v578_v23  ;;  %v540_v34 = vmax.f32 %v436_v24, 0.0  ;;  %v542_v35 = vmax.f32 %v525_v25, 0.0 }
 0x20a   :  { %v579_v0 = vmul.f32 %v565_v31, %v539_v29  ;;  %v581_v36 = vmul.f32 %v565_v31, %v541_v30  ;;  %v819_v54 = vmov 1966171168   ;;  %v634_v56 = vlaneseq }
 0x20b   :  { %v580_v37 = vmul.f32 %v565_v31, %v540_v34  ;;  %v582_v38 = vmul.f32 %v565_v31, %v542_v35  ;;  %v632_v55 = vunpack.c.l.s4 %v819_v54  ;;  %v620_v62 = vstv %s1008_s6  ;;  %s665_s6 = sshll.u32 %s820_s15, 4  ;;  %s666_s6 = int_to_ptr.vmem [resolvable:$true] %s665_s6 }
 0x20c   :  { %v585_v39 = vadd.f32 %v584_v27, %v579_v0  ;;  %v603_v40 = vadd.f32 %v602_v28, %v581_v36  ;;  %v635_v4 = vshrl.u32 %v634_v56, 7  ;;  %vm656_vm2 = vcmp.lt.s32.totalorder %v634_v56, 512  ;;  %s784_s1 = scalar_lea.vmem %s666_s6, 64  ;;  %p789_p11 = scmp.lt.s32.totalorder %s666_s6, %s666_s6 }
 0x20d   :  { %v594_v41 = vadd.f32 %v593_v32, %v580_v37  ;;  %v612_v42 = vadd.f32 %v611_v33, %v582_v38  ;;  %v633_v3 = vunpack.c.0.s8 %v632_v55  ;;  %p785_p10 = scmp.ne.s32.totalorder %s666_s6, %s784_s1  ;;  %p790_p12 = scmp.lt.s32.totalorder %s784_s1, %s784_s1 }
 0x20e   :  { %v586_v43 = vrot.slane %v585_v39, 4  ;;  %v604_v44 = vrot.slane %v603_v40, 4 }
 0x20f   :  { %v595_v26 = vrot.slane %v594_v41, 4  ;;  %v613_v45 = vrot.slane %v612_v42, 4  ;;  %v636_v13 = vsub.s32 %v633_v3, %v635_v4  ;;  %p791_p13 = por %p790_p12, %p789_p11 }
 0x210   :  { %v587_v46 = vadd.f32 %v586_v43, %v585_v39  ;;  %v605_v47 = vadd.f32 %v604_v44, %v603_v40 }
 0x211   :  { %v596_v48 = vadd.f32 %v595_v26, %v594_v41  ;;  %v614_v49 = vadd.f32 %v613_v45, %v612_v42  ;;  %p792_p0 = pnand %p791_p13, %p785_p10 }
 0x212   :  { %v588_v50 = vrot.slane %v587_v46, 2  ;;  %v606_v51 = vrot.slane %v605_v47, 2 }
 0x213   :  { %v597_v52 = vrot.slane %v596_v48, 2  ;;  %v615_v53 = vrot.slane %v614_v49, 2 }
 0x214   :  { %v589_v57 = vadd.f32 %v588_v50, %v587_v46  ;;  %v607_v58 = vadd.f32 %v606_v51, %v605_v47 }
 0x215   :  { %v598_v59 = vadd.f32 %v597_v52, %v596_v48  ;;  %v616_v60 = vadd.f32 %v615_v53, %v614_v49 }
 0x216   :  { %v590_v61 = vrot.slane %v589_v57, 1  ;;  %v608_v63 = vrot.slane %v607_v58, 1 }
 0x217   :  { %v599_v1 = vrot.slane %v598_v59, 1  ;;  %v617_v2 = vrot.slane %v616_v60, 1 }
 0x218   :  { %v591_v5 = vadd.f32 %v590_v61, %v589_v57  ;;  %v609_v6 = vadd.f32 %v608_v63, %v607_v58 }
 0x219   :  { %v600_v7 = vadd.f32 %v599_v1, %v598_v59  ;;  %v618_v8 = vadd.f32 %v617_v2, %v616_v60 }
 0x21a   :  { %v621_v9 = vadd.f32 %v620_v62, %v591_v5  ;;  %v623_v10 = vadd.f32 %v620_v62, %v609_v6 }
 0x21b   :  { %v622_v11 = vadd.f32 %v620_v62, %v600_v7  ;;  %v624_v12 = vadd.f32 %v620_v62, %v618_v8 }
 0x21d   :  { %v629_v14 = vcombine.low %v621_v9, %v622_v11  ;;  %v630_v15 = vcombine.low %v623_v10, %v624_v12 }
 0x21f   :  { %v637_v16 = vrot.slane %v629_v14, %v636_v13  ;;  %v644_v17 = vrot.slane %v630_v15, %v636_v13 }
 0x221   :  { %v645_v18 = vcombine.low %v637_v16, %v644_v17 }
 0x223   :  { %v652_v19 = vrot.slane %v645_v18, %v636_v13 }
 0x225   :  { %658 = vst.msk [vmem:[#allocation9] sm:$0xf] %vm656_vm2, %v652_v19 }
 0x226   :  { %795 = shalt.err (!%p792_p0)
}
 0x227   :  { %s796_s17 = scalar_lea.hbm %s1009_s7, 64 }
 0x228   :  { %p797_p1 = scmp.ne.s32.totalorder %s1009_s7, %s796_s17  ;;  %p800_p2 = scmp.lt.u32.totalorder %s796_s17, %s1009_s7 }
 0x22a   :  { %p802_p3 = pnand %p800_p2, %p797_p1 }
 0x22c   :  { %805 = shalt.err (!%p802_p3)
}
 0x22d   :  { %668 = dma.vmem_to_hbm [thread:$0]  %s666_s6, 64, %s1009_s7, [#allocation5]  }
 0x22e   :  { %810 = dma.done.wait [#allocation5], 64  }
 0x22f   :  { %811 = vsyncadd [#allocation5], 4294967232 }
 0x230   :  { %672 = vsyncpa [#allocation4], 1 }
 0x231   :  { %673 = vsyncpa [#allocation7], 1 }
 0x232   :  { %674 = vsyncpa [#allocation5], 1 }

</bundles_post_ra>
